<compile_context>
chip_gen: v6e
topology: v6e:2x2x1
jax: 0.10.0
libtpu: 0.0.40
codegen_flags: <defaults>
</compile_context>

<pallas_src>
import math

import jax
import jax.numpy as jnp
import numpy as np
from jax import lax
from jax.experimental import pallas as pl
from jax.experimental.pallas import tpu as pltpu

# ---------------------------------------------------------------------------
# Problem sizes (Block(dim) with dim=32 on a 16x16 feature map, batch 2)
# ---------------------------------------------------------------------------
N, C, H, W = 2, 32, 16, 16
K = 7                         # depthwise kernel size
P = 3                         # padding
HP = H + 2 * P                # row-padded height (22)
C4 = 4 * C                    # MLP hidden dim (128)
WC = W * C                    # lane-flattened row width (512 = 4 * 128)
W4C = W * C4                  # lane-flattened hidden width (2048)
EPS = 1e-6
LAYER_SCALE_INIT = 1e-6
INV_SQRT2 = 1.0 / math.sqrt(2.0)


# ---------------------------------------------------------------------------
# Pallas kernel: one batch element per grid step, everything lane-dense.
# ---------------------------------------------------------------------------
def convnext_block_kernel(
    x_ref,      # (H, WC)        f32 lane-dense input slab (also the residual)
    dww_ref,    # (K*K, H, WC)   f32 taps: tiled W times, boundary-masked, sublane-replicated
    dwb_ref,    # (1, WC)        f32 depthwise bias, tiled W times
    avg_ref,    # (WC, WC)       f32 block-averaging matrix (1/C in each CxC diag block)
    w1_ref,     # (WC, W4C)      bf16 block-diagonal pwconv1 weights (LN affine folded in)
    b1_ref,     # (1, W4C)       f32 pwconv1 bias (LN affine folded in), tiled W times
    w2_ref,     # (W4C, WC)      bf16 block-diagonal pwconv2 weights (gamma folded in)
    b2_ref,     # (1, WC)        f32 pwconv2 bias (gamma folded in), tiled W times
    out_ref,    # (H, WC)        lane-dense output slab
):
    x = x_ref[...]                                     # single lane-dense read

    # ---- depthwise 7x7 conv --------------------------------------------------
    # Row zero-pad only; column shifts are lane rotates with wrapped lanes killed
    # by zeros baked into the tap weights.
    zrow = jnp.zeros((P, WC), jnp.float32)
    xp = jnp.concatenate([zrow, x, zrow], axis=0)      # (HP, WC)

    acc = jnp.zeros((H, WC), jnp.float32)
    for kh in range(K):
        xh = xp[kh:kh + H, :]                          # (H, WC): only 7 sublane slices total
        for kw in range(K):
            s = ((P - kw) * C) % WC                    # static lane shift
            xs = xh if s == 0 else pltpu.roll(xh, s, axis=1)   # XLU lane rotate
            acc = acc + xs * dww_ref[kh * K + kw]      # dense FMA over whole vregs
    acc = acc + dwb_ref[...]                           # depthwise bias

    # ---- LayerNorm over channels (stats via block-averaging matmul on MXU) ----
    avg = avg_ref[...]
    mu = jnp.dot(acc, avg, preferred_element_type=jnp.float32)     # per-pixel mean, lane-dense
    xc = acc - mu
    var = jnp.dot(xc * xc, avg, preferred_element_type=jnp.float32)
    xn = xc * lax.rsqrt(var + EPS)                     # LN affine folded into w1/b1

    # ---- pointwise MLP, lane-dense via block-diagonal weights (bf16 MXU) -------
    h1 = jnp.dot(xn.astype(jnp.bfloat16), w1_ref[...],
                 preferred_element_type=jnp.float32) + b1_ref[...]         # (H, W4C)
    # exact erf GELU (nn.GELU default); kept f32 elementwise for v5e fidelity.
    h1 = 0.5 * h1 * (1.0 + lax.erf(h1 * INV_SQRT2))
    y = jnp.dot(h1.astype(jnp.bfloat16), w2_ref[...],
                preferred_element_type=jnp.float32) + b2_ref[...]          # (H, WC)

    # ---- residual add + single unmasked lane-dense store -----------------------
    out_ref[...] = (x + y).astype(out_ref.dtype)


# ---------------------------------------------------------------------------
# pallas_call wrapper (lane-dense (N*H, W*C) in/out — chainable across Blocks)
# ---------------------------------------------------------------------------
def _block_call(x_flat, prep):
    return pl.pallas_call(
        convnext_block_kernel,
        out_shape=jax.ShapeDtypeStruct((N * H, WC), x_flat.dtype),
        grid_spec=pltpu.PrefetchScalarGridSpec(
            num_scalar_prefetch=0,
            grid=(N,),                                   # one batch element / step (one / TC on v7x)
            in_specs=[
                pl.BlockSpec((H, WC),       lambda n: (n, 0)),       # x slab
                pl.BlockSpec((K * K, H, WC), lambda n: (0, 0, 0)),   # depthwise taps
                pl.BlockSpec((1, WC),       lambda n: (0, 0)),       # depthwise bias
                pl.BlockSpec((WC, WC),      lambda n: (0, 0)),       # LN averaging matrix
                pl.BlockSpec((WC, W4C),     lambda n: (0, 0)),       # pwconv1 block-diag (bf16)
                pl.BlockSpec((1, W4C),      lambda n: (0, 0)),       # pwconv1 bias
                pl.BlockSpec((W4C, WC),     lambda n: (0, 0)),       # pwconv2 block-diag (bf16)
                pl.BlockSpec((1, WC),       lambda n: (0, 0)),       # pwconv2 bias
            ],
            out_specs=pl.BlockSpec((H, WC), lambda n: (n, 0)),
        ),
        compiler_params=pltpu.CompilerParams(
            dimension_semantics=("parallel",),
            vmem_limit_bytes=32 * 1024 * 1024,
        ),
    )(x_flat, prep["dww_m"], prep["dwb_t"], prep["ln_avg"],
      prep["w1_blk"], prep["b1_blk"], prep["w2_blk"], prep["b2_blk"])


convnext_block_flat = jax.jit(_block_call)   # lane-dense interface for chained Blocks


@jax.jit
def convnext_block(x_nchw, prep):
    # NCHW interface to match the PyTorch module; the transposes are wrapper-only.
    # TODO(synk): when chaining Blocks, keep activations in the lane-dense
    # (N*H, W*C) layout and call convnext_block_flat directly to avoid the
    # NCHW<->NHWC HBM round trips around every block.
    x_flat = jnp.transpose(x_nchw, (0, 2, 3, 1)).reshape(N * H, WC)
    out_flat = _block_call(x_flat, prep)
    return jnp.transpose(out_flat.reshape(N, H, W, C), (0, 3, 1, 2))


# ---------------------------------------------------------------------------
# One-time probe of pltpu.roll's rotation direction (decides the kw->tap map
# used when baking column-boundary zeros into the weights).
# ---------------------------------------------------------------------------
def _probe_roll_direction():
    def kern(x_ref, o_ref):
        o_ref[...] = pltpu.roll(x_ref[...], C, axis=1)

    x = jnp.arange(H * WC, dtype=jnp.float32).reshape(H, WC)
    y = np.asarray(
        pl.pallas_call(kern, out_shape=jax.ShapeDtypeStruct((H, WC), jnp.float32))(x)
    )
    xn_ = np.asarray(x)
    if np.array_equal(y, np.roll(xn_, C, axis=1)):
        return True            # pltpu.roll(x, s)[i] == x[i - s]  (jnp.roll semantics)
    if np.array_equal(y, np.roll(xn_, -C, axis=1)):
        return False           # opposite rotation direction
    raise RuntimeError("Unexpected pltpu.roll semantics")


# ---------------------------------------------------------------------------
# One-time, host-side parameter transform (all weight prep hoisted out of jit).
# ---------------------------------------------------------------------------
def prepare_params(params, roll_like_jnp=True):
    dww = np.asarray(params["dww"], np.float32)              # (K, K, C)
    dwb = np.asarray(params["dwb"], np.float32).reshape(C)
    lnw = np.asarray(params["lnw"], np.float32).reshape(C)
    lnb = np.asarray(params["lnb"], np.float32).reshape(C)
    w1 = np.asarray(params["w1"], np.float32)                # (C, 4C), x @ W layout
    b1 = np.asarray(params["b1"], np.float32).reshape(C4)
    w2 = np.asarray(params["w2"], np.float32)                # (4C, C)
    b2 = np.asarray(params["b2"], np.float32).reshape(C)
    gamma = np.asarray(params["gamma"], np.float32).reshape(C)

    # Depthwise taps: tiled across W, column-boundary-masked, sublane-replicated.
    dww_m = np.zeros((K * K, H, WC), np.float32)
    for kh in range(K):
        for kw in range(K):
            kw_eff = kw if roll_like_jnp else (K - 1 - kw)
            row = np.zeros((WC,), np.float32)
            for w in range(W):
                if 0 <= w + kw_eff - P < W:                  # wrapped lanes -> zero weight
                    row[w * C:(w + 1) * C] = dww[kh, kw_eff]
            dww_m[kh * K + kw] = row[None, :]                # replicate over H sublanes
    dwb_t = np.tile(dwb, W)[None, :]                         # (1, WC)

    # LN block-averaging matrix: 1/C in each CxC diagonal block.
    ln_avg = np.zeros((WC, WC), np.float32)
    for w in range(W):
        ln_avg[w * C:(w + 1) * C, w * C:(w + 1) * C] = 1.0 / C

    # Fold LN affine into pwconv1, gamma into pwconv2 (in f32), block-diagonalize.
    w1f = w1 * lnw[:, None]
    b1f = b1 + lnb @ w1
    w2f = w2 * gamma[None, :]
    b2f = b2 * gamma
    w1_blk = np.zeros((WC, W4C), np.float32)
    w2_blk = np.zeros((W4C, WC), np.float32)
    for w in range(W):
        w1_blk[w * C:(w + 1) * C, w * C4:(w + 1) * C4] = w1f
        w2_blk[w * C4:(w + 1) * C4, w * C:(w + 1) * C] = w2f
    b1_blk = np.tile(b1f, W)[None, :]                        # (1, W4C)
    b2_blk = np.tile(b2f, W)[None, :]                        # (1, WC)

    return dict(
        dww_m=jnp.asarray(dww_m),
        dwb_t=jnp.asarray(dwb_t),
        ln_avg=jnp.asarray(ln_avg),
        w1_blk=jnp.asarray(w1_blk, jnp.bfloat16),
        b1_blk=jnp.asarray(b1_blk),
        w2_blk=jnp.asarray(w2_blk, jnp.bfloat16),
        b2_blk=jnp.asarray(b2_blk),
    )


# ---------------------------------------------------------------------------
# Pure-JAX f32 reference (correctness check).
# ---------------------------------------------------------------------------
def convnext_block_ref(x_nchw, params):
    x = jnp.transpose(x_nchw, (0, 2, 3, 1))                  # NHWC
    w_dw = params["dww"].reshape(K, K, 1, C)                 # HWIO, groups=C
    y = lax.conv_general_dilated(
        x, w_dw, window_strides=(1, 1), padding=((P, P), (P, P)),
        dimension_numbers=("NHWC", "HWIO", "NHWC"), feature_group_count=C,
    ) + params["dwb"][0]
    mu = jnp.mean(y, axis=-1, keepdims=True)
    var = jnp.mean((y - mu) ** 2, axis=-1, keepdims=True)
    yn = (y - mu) / jnp.sqrt(var + EPS) * params["lnw"][0] + params["lnb"][0]
    h = yn @ params["w1"] + params["b1"][0]
    h = 0.5 * h * (1.0 + lax.erf(h * INV_SQRT2))
    h = h @ params["w2"] + params["b2"][0]
    h = h * params["gamma"][0]
    return x_nchw + jnp.transpose(h, (0, 3, 1, 2))


# ---------------------------------------------------------------------------
# Deterministic parameter init (shapes from Block.__init__).
# ---------------------------------------------------------------------------
def init_params(key, layer_scale_init):
    ks = jax.random.split(key, 6)
    dww = jax.random.normal(ks[0], (K, K, C), jnp.float32) * 0.1   # depthwise conv weight
    dwb = jax.random.normal(ks[1], (1, C), jnp.float32) * 0.1      # depthwise conv bias
    lnw = jnp.ones((1, C), jnp.float32)                            # LayerNorm weight
    lnb = jnp.zeros((1, C), jnp.float32)                           # LayerNorm bias
    w1 = jax.random.normal(ks[2], (C, C4), jnp.float32) * 0.05     # Linear(dim, 4*dim)
    b1 = jax.random.normal(ks[3], (1, C4), jnp.float32) * 0.05
    w2 = jax.random.normal(ks[4], (C4, C), jnp.float32) * 0.05     # Linear(4*dim, dim)
    b2 = jax.random.normal(ks[5], (1, C), jnp.float32) * 0.05
    gamma = jnp.full((1, C), layer_scale_init, jnp.float32)        # layer scale
    return dict(dww=dww, dwb=dwb, lnw=lnw, lnb=lnb,
                w1=w1, b1=b1, w2=w2, b2=b2, gamma=gamma)
    # TODO(synk): drop_path (stochastic depth) is Identity at rate=0.0, so it is omitted.


if __name__ == "__main__":
    key = jax.random.PRNGKey(0)
    kx, kp = jax.random.split(key)
    x = jax.random.normal(kx, (N, C, H, W), jnp.float32)           # NCHW like PyTorch

    roll_like_jnp = _probe_roll_direction()

    # 1) module-faithful init (gamma = 1e-6)
    params = init_params(kp, LAYER_SCALE_INIT)
    prep = prepare_params(params, roll_like_jnp)
    out = jax.block_until_ready(convnext_block(x, prep))
    ref = jax.block_until_ready(convnext_block_ref(x, params))
    np.testing.assert_allclose(np.asarray(out), np.asarray(ref), rtol=1e-4, atol=1e-4)

    # 2) gamma = 1 so the conv/LN/MLP path is exercised at output scale
    #    (looser tolerance: MLP matmul operands are bf16 inside the kernel).
    params2 = dict(params, gamma=jnp.ones((1, C), jnp.float32))
    prep2 = prepare_params(params2, roll_like_jnp)
    out2 = jax.block_until_ready(convnext_block(x, prep2))
    ref2 = jax.block_until_ready(convnext_block_ref(x, params2))
    np.testing.assert_allclose(np.asarray(out2), np.asarray(ref2), rtol=1e-2, atol=1e-2)

    print("KERNEL_OK")
</pallas_src>

<mosaic_0001>
module attributes {stable_mosaic.version = 11 : i64} {
  func.func @kern(%arg0: memref<16x512xf32, #tpu.memory_space<vmem>>, %arg1: memref<16x512xf32, #tpu.memory_space<vmem>>) attributes {dimension_semantics = [], scalar_prefetch = 0 : i64, scratch_operands = 0 : i64, tpu.core_type = #tpu.core_type<tc>} {
    %c0 = arith.constant 0 : index
    %c0_0 = arith.constant 0 : index
    %0 = vector.load %arg0[%c0, %c0_0] : memref<16x512xf32, #tpu.memory_space<vmem>>, vector<16x512xf32>
    %c32_i32 = arith.constant 32 : i32
    %1 = tpu.dynamic_rotate %0 by %c32_i32 dim 1 : vector<16x512xf32>, i32 -> vector<16x512xf32>
    %c0_1 = arith.constant 0 : index
    %c0_2 = arith.constant 0 : index
    %2 = vector.load %arg1[%c0_1, %c0_2] : memref<16x512xf32, #tpu.memory_space<vmem>>, vector<16x512xf32>
    tpu.vector_store %arg1[%c0_1, %c0_2], %1 {strides = array<i32>} : memref<16x512xf32, #tpu.memory_space<vmem>>, vector<16x512xf32>,
    return
  }
}

</mosaic_0001>

<bundles_post_ra>
// kernel: tpu_custom_call.1
= control target key start
LH: loop header
LB: loop body
LE: loop exit
PB: predicated region body
PF: predicated region fallthrough
CT: control target
= control target key end

     0   :  { %6 = vsyncpa [#allocation3], 0  ;;  %s173_s0 = inlined_call_operand.hbm [shape: f32[16,512], index: 0, kind: input, shape index: {}]   ;;  %s174_s1 = inlined_call_operand.hbm [shape: f32[16,512], index: 1, kind: output, shape index: {}]  }
   0x1   :  { %7 = vsyncpa [#allocation4], 0  ;;  %s131_s6 = smov [#allocation2]  }
   0x2   :  { %s13_s7 = sshll.u32 %s131_s6, 4  ;;  %s14_s7 = int_to_ptr.vmem [resolvable:$true] %s13_s7 }
   0x3   :  { %s95_s8 = scalar_lea.vmem %s14_s7, 1024  ;;  %p100_p1 = scmp.lt.s32.totalorder %s14_s7, %s14_s7 }
   0x4   :  { %p96_p0 = scmp.ne.s32.totalorder %s14_s7, %s95_s8  ;;  %p101_p2 = scmp.lt.s32.totalorder %s95_s8, %s95_s8 }
   0x6   :  { %p102_p3 = por %p101_p2, %p100_p1 }
   0x8   :  { %p103_p4 = pnand %p102_p3, %p96_p0 }
   0xa   :  { %106 = shalt.err (!%p103_p4)
}
   0xb   :  { %s132_s9 = smov 512   ;;  %s133_s10 = smov 32  }
   0xc   :  { %19 = dma.hbm_to_vmem [thread:$0]  %s173_s0, 1024, %s14_s7, [#allocation3], %s132_s9, %s132_s9, %s133_s10  }
   0xd   :  { %127 = dma.done.wait [#allocation3], 1024  }
   0xe   :  { %128 = vsyncadd [#allocation3], 4294966272  ;;  %v24_v0 = vld [vmem:[#allocation2 + $0x8] sm:$0xff]  ;;  %v23_v1 = vld [vmem:[#allocation2] sm:$0xff]  ;;  %v47_v8 = vlaneseq  ;;  %s134_s0 = smov [#allocation5]  }
   0xf   :  { %35 = vrot.lane.b32.xlu1 %v24_v0, %s133_s10  ;;  %31 = vrot.lane.b32.xlu0 %v23_v1, %s133_s10  ;;  %v28_v2 = vld [vmem:[#allocation2 + $0x28] sm:$0xff]  ;;  %v27_v3 = vld [vmem:[#allocation2 + $0x20] sm:$0xff]  ;;  %v29_v4 = vld [vmem:[#allocation2 + $0x30] sm:$0xff]  ;;  %s71_s13 = sshll.u32 %s134_s0, 4  ;;  %s72_s13 = int_to_ptr.vmem [resolvable:$true] %s71_s13 }
  0x10   :  { %v25_v5 = vld [vmem:[#allocation2 + $0x10] sm:$0xff]  ;;  %v30_v6 = vld [vmem:[#allocation2 + $0x38] sm:$0xff]  ;;  %v48_v9 = vand.u32 127, %v47_v8  ;;  %s107_s14 = scalar_lea.vmem %s72_s13, 1024  ;;  %p112_p6 = scmp.lt.s32.totalorder %s72_s13, %s72_s13 }
  0x11   :  { %v26_v7 = vld [vmem:[#allocation2 + $0x18] sm:$0xff]  ;;  %p108_p5 = scmp.ne.s32.totalorder %s72_s13, %s107_s14  ;;  %p113_p7 = scmp.lt.s32.totalorder %s107_s14, %s107_s14 }
  0x12   :  { %vm49_vm0 = vcmp.lt.s32.totalorder %v48_v9, 32 }
  0x13   :  { %37 = vrot.lane.b32.xlu1 %v28_v2, %s133_s10  ;;  %33 = vrot.lane.b32.xlu0 %v27_v3, %s133_s10  ;;  %p114_p8 = por %p113_p7, %p112_p6 }
  0x15   :  { %p115_p9 = pnand %p114_p8, %p108_p5 }
  0x17   :  { %41 = vrot.lane.b32.xlu1 %v29_v4, %s133_s10  ;;  %39 = vrot.lane.b32.xlu0 %v25_v5, %s133_s10 }
  0x1b   :  { %45 = vrot.lane.b32.xlu1 %v30_v6, %s133_s10  ;;  %43 = vrot.lane.b32.xlu0 %v26_v7, %s133_s10 }
  0x81   :  { %v36_v10 = vpop.permute.xlu1 %35  ;;  %v32_v11 = vpop.permute.xlu0 %31 }
  0x82   :  { %v54_v12 = vsel %vm49_vm0, %v32_v11, %v36_v10 }
  0x83   :  { %59 = vst [vmem:[#allocation5 + $0x8] sm:$0xff] %v54_v12 }
  0x85   :  { %v38_v13 = vpop.permute.xlu1 %37  ;;  %v34_v14 = vpop.permute.xlu0 %33 }
  0x86   :  { %v55_v15 = vsel %vm49_vm0, %v34_v14, %v38_v13 }
  0x87   :  { %63 = vst [vmem:[#allocation5 + $0x28] sm:$0xff] %v55_v15 }
  0x89   :  { %v42_v16 = vpop.permute.xlu1 %41  ;;  %v40_v17 = vpop.permute.xlu0 %39 }
  0x8a   :  { %v53_v18 = vsel %vm49_vm0, %v38_v13, %v42_v16  ;;  %v52_v19 = vsel %vm49_vm0, %v36_v10, %v40_v17 }
  0x8b   :  { %64 = vst [vmem:[#allocation5 + $0x30] sm:$0xff] %v53_v18  ;;  %60 = vst [vmem:[#allocation5 + $0x10] sm:$0xff] %v52_v19 }
  0x8d   :  { %v46_v20 = vpop.permute.xlu1 %45  ;;  %v44_v21 = vpop.permute.xlu0 %43 }
  0x8e   :  { %v51_v22 = vsel %vm49_vm0, %v42_v16, %v46_v20  ;;  %v57_v23 = vsel %vm49_vm0, %v46_v20, %v34_v14  ;;  %v50_v24 = vsel %vm49_vm0, %v40_v17, %v44_v21  ;;  %v56_v25 = vsel %vm49_vm0, %v44_v21, %v32_v11 }
  0x8f   :  { %62 = vst [vmem:[#allocation5 + $0x20] sm:$0xff] %v57_v23  ;;  %65 = vst [vmem:[#allocation5 + $0x38] sm:$0xff] %v51_v22 }
  0x90   :  { %58 = vst [vmem:[#allocation5] sm:$0xff] %v56_v25  ;;  %61 = vst [vmem:[#allocation5 + $0x18] sm:$0xff] %v50_v24 }
  0x91   :  { %118 = shalt.err (!%p115_p9)
}
  0x92   :  { %77 = dma.vmem_to_hbm [thread:$0]  %s72_s13, 1024, %s174_s1, [#allocation4], %s132_s9, %s132_s9, %s133_s10  }
  0x93   :  { %129 = dma.done.wait [#allocation4], 1024  }
  0x94   :  { %130 = vsyncadd [#allocation4], 4294966272 }
  0x95   :  { %81 = vsyncpa [#allocation3], 1 }
  0x96   :  { %82 = vsyncpa [#allocation4], 1 }

</bundles_post_ra>
